<compile_context>
chip_gen: v5e
topology: v5e:2x2
jax: 0.10.0
libtpu: 0.0.40
codegen_flags: <defaults>
</compile_context>

<pallas_src>
import math
import functools

import jax
import jax.numpy as jnp
from jax.experimental import pallas as pl
from jax.experimental.pallas import tpu as pltpu


def _attn_kernel(*refs, scale, has_mask):
    if has_mask:
        mask_ref, q_ref, k_ref, v_ref, o_ref, p_ref = refs
    else:
        q_ref, k_ref, v_ref, o_ref, p_ref = refs
        mask_ref = None

    q = q_ref[...]          # (tq, D)
    k = k_ref[...]          # (Sk, D)
    v = v_ref[...]          # (Sk, D)

    # scores = (Q @ K^T) * 1/sqrt(D)  -- contract over the head dim on the MXU.
    s = jax.lax.dot_general(
        q, k,
        dimension_numbers=(((1,), (1,)), ((), ())),
        preferred_element_type=jnp.float32,
    ) * jnp.float32(scale)                      # (tq, Sk)

    if mask_ref is not None:
        s = jnp.where(mask_ref[...] == 0, jnp.float32(-1e9), s)

    # Row softmax (numerically stable); one exp per element, one divide per row.
    m = jnp.max(s, axis=-1, keepdims=True)
    e = jnp.exp(s - m)
    inv_denom = 1.0 / jnp.sum(e, axis=-1, keepdims=True)
    p = e * inv_denom                            # (tq, Sk)

    o = jnp.dot(p.astype(v.dtype), v, preferred_element_type=jnp.float32)

    p_ref[...] = p.astype(p_ref.dtype)
    o_ref[...] = o.astype(o_ref.dtype)


def _pick_q_tile(sq):
    for t in (512, 256, 128):
        if sq % t == 0:
            return t
    return sq  # full extent is always a legal block size


def attention(query, key, value, mask=None, *, q_tile=None):
    """query/key/value: (B, H, S, D). mask (optional): broadcastable to (B, H, Sq, Sk).

    Returns (output (B,H,Sq,D), p_attn (B,H,Sq,Sk)) matching the PyTorch module.
    """
    B, H, Sq, D = query.shape
    Sk = key.shape[2]
    assert key.shape == (B, H, Sk, D)
    assert value.shape == (B, H, Sk, D)

    if q_tile is None:
        q_tile = _pick_q_tile(Sq)
    assert Sq % q_tile == 0

    scale = 1.0 / math.sqrt(D)
    grid = (B, H, Sq // q_tile)
    has_mask = mask is not None

    in_specs = [
        pl.BlockSpec((None, None, q_tile, D), lambda b, h, i: (b, h, i, 0)),  # Q tile
        pl.BlockSpec((None, None, Sk, D), lambda b, h, i: (b, h, 0, 0)),      # full K
        pl.BlockSpec((None, None, Sk, D), lambda b, h, i: (b, h, 0, 0)),      # full V
    ]
    args = [query, key, value]
    if has_mask:
        mask = jnp.broadcast_to(mask, (B, H, Sq, Sk)).astype(jnp.int32)
        in_specs.insert(
            0, pl.BlockSpec((None, None, q_tile, Sk), lambda b, h, i: (b, h, i, 0)))
        args.insert(0, mask)

    out_shape = (
        jax.ShapeDtypeStruct((B, H, Sq, D), query.dtype),
        jax.ShapeDtypeStruct((B, H, Sq, Sk), jnp.float32),
    )
    out_specs = (
        pl.BlockSpec((None, None, q_tile, D), lambda b, h, i: (b, h, i, 0)),
        pl.BlockSpec((None, None, q_tile, Sk), lambda b, h, i: (b, h, i, 0)),
    )

    kernel = functools.partial(_attn_kernel, scale=scale, has_mask=has_mask)
    out, p_attn = pl.pallas_call(
        kernel,
        out_shape=out_shape,
        grid=grid,
        in_specs=in_specs,
        out_specs=out_specs,
        compiler_params=pltpu.CompilerParams(
            dimension_semantics=("parallel", "parallel", "parallel")),
    )(*args)
    return out, p_attn


def _reference_attention(q, k, v, mask=None):
    d = q.shape[-1]
    scores = jnp.einsum("bhqd,bhkd->bhqk", q, k) / math.sqrt(d)
    if mask is not None:
        scores = jnp.where(mask == 0, -1e9, scores)
    p = jax.nn.softmax(scores, axis=-1)
    out = jnp.einsum("bhqk,bhkd->bhqd", p, v)
    return out, p


if __name__ == "__main__":
    key = jax.random.PRNGKey(0)
    kq, kk, kv, km = jax.random.split(key, 4)
    B, H, S, D = 2, 2, 8, 32

    q = jax.random.normal(kq, (B, H, S, D), dtype=jnp.float32)
    k = jax.random.normal(kk, (B, H, S, D), dtype=jnp.float32)
    v = jax.random.normal(kv, (B, H, S, D), dtype=jnp.float32)
    mask = (jax.random.uniform(km, (B, 1, S, S)) > 0.3).astype(jnp.int32)

    # Loose-ish tolerance: MXU f32 matmul pass selection inside the kernel may differ
    # slightly from the XLA reference path; real bugs would be off by O(1).
    ATOL = RTOL = 1e-2

    # Unmasked path (matches forward(query, key, value) with mask=None, dropout=None).
    out, p_attn = attention(q, k, v)
    out, p_attn = jax.block_until_ready((out, p_attn))
    ref_out, ref_p = _reference_attention(q, k, v)
    assert out.shape == (B, H, S, D) and p_attn.shape == (B, H, S, S)
    assert jnp.allclose(out, ref_out, atol=ATOL, rtol=RTOL)
    assert jnp.allclose(p_attn, ref_p, atol=ATOL, rtol=RTOL)

    # Masked path.
    out_m, p_m = attention(q, k, v, mask=mask)
    out_m, p_m = jax.block_until_ready((out_m, p_m))
    ref_out_m, ref_p_m = _reference_attention(q, k, v, mask=mask)
    assert jnp.allclose(out_m, ref_out_m, atol=ATOL, rtol=RTOL)
    assert jnp.allclose(p_m, ref_p_m, atol=ATOL, rtol=RTOL)

    print("KERNEL_OK")
</pallas_src>

<mosaic_0001>
module attributes {stable_mosaic.version = 11 : i64} {
  func.func @_attn_kernel(%arg0: i32, %arg1: i32, %arg2: i32, %arg3: memref<1x1x8x32xf32, #tpu.memory_space<vmem>>, %arg4: memref<1x1x8x32xf32, #tpu.memory_space<vmem>>, %arg5: memref<1x1x8x32xf32, #tpu.memory_space<vmem>>, %arg6: memref<1x1x8x32xf32, #tpu.memory_space<vmem>>, %arg7: memref<1x1x8x8xf32, #tpu.memory_space<vmem>>) attributes {dimension_semantics = [#tpu.dimension_semantics<parallel>, #tpu.dimension_semantics<parallel>, #tpu.dimension_semantics<parallel>], iteration_bounds = array<i64: 2, 2, 1>, scalar_prefetch = 0 : i64, scratch_operands = 0 : i64, tpu.core_type = #tpu.core_type<tc>, window_params = [{transform_indices = @transform_0, window_bounds = array<i64: 1, 1, 8, 32>}, {transform_indices = @transform_1, window_bounds = array<i64: 1, 1, 8, 32>}, {transform_indices = @transform_2, window_bounds = array<i64: 1, 1, 8, 32>}, {transform_indices = @transform_3, window_bounds = array<i64: 1, 1, 8, 32>}, {transform_indices = @transform_4, window_bounds = array<i64: 1, 1, 8, 8>}]} {
    %c0 = arith.constant 0 : index
    %c0_0 = arith.constant 0 : index
    %c0_1 = arith.constant 0 : index
    %c0_2 = arith.constant 0 : index
    %0 = vector.load %arg3[%c0, %c0_0, %c0_1, %c0_2] : memref<1x1x8x32xf32, #tpu.memory_space<vmem>>, vector<1x1x8x32xf32>
    %1 = vector.shape_cast %0 : vector<1x1x8x32xf32> to vector<8x32xf32>
    %c0_3 = arith.constant 0 : index
    %c0_4 = arith.constant 0 : index
    %c0_5 = arith.constant 0 : index
    %c0_6 = arith.constant 0 : index
    %2 = vector.load %arg4[%c0_3, %c0_4, %c0_5, %c0_6] : memref<1x1x8x32xf32, #tpu.memory_space<vmem>>, vector<1x1x8x32xf32>
    %3 = vector.shape_cast %2 : vector<1x1x8x32xf32> to vector<8x32xf32>
    %c0_7 = arith.constant 0 : index
    %c0_8 = arith.constant 0 : index
    %c0_9 = arith.constant 0 : index
    %c0_10 = arith.constant 0 : index
    %4 = vector.load %arg5[%c0_7, %c0_8, %c0_9, %c0_10] : memref<1x1x8x32xf32, #tpu.memory_space<vmem>>, vector<1x1x8x32xf32>
    %5 = vector.shape_cast %4 : vector<1x1x8x32xf32> to vector<8x32xf32>
    %cst = arith.constant dense<0.000000e+00> : vector<8x8xf32>
    %6 = tpu.matmul %1, %3, %cst {dimension_numbers = #tpu.dot_dimension_numbers<[1], [1], [0], [0], [0, 0, 1, 0], [], []>} : vector<8x32xf32>, vector<8x32xf32>, vector<8x8xf32> -> vector<8x8xf32>
    %cst_11 = arith.constant 0.176776692 : f32
    %7 = vector.broadcast %cst_11 : f32 to vector<8x8xf32>
    %8 = arith.mulf %6, %7 : vector<8x8xf32>
    %cst_12 = arith.constant dense<0xFF800000> : vector<8xf32>
    %9 = vector.multi_reduction <maximumf>, %8, %cst_12 [1] : vector<8x8xf32> to vector<8xf32>
    %10 = vector.shape_cast %9 : vector<8xf32> to vector<8x1xf32>
    %11 = vector.broadcast %10 : vector<8x1xf32> to vector<8x8xf32>
    %12 = arith.subf %8, %11 : vector<8x8xf32>
    %13 = math.exp %12 : vector<8x8xf32>
    %cst_13 = arith.constant dense<0.000000e+00> : vector<8xf32>
    %14 = vector.multi_reduction <add>, %13, %cst_13 [1] : vector<8x8xf32> to vector<8xf32>
    %15 = vector.shape_cast %14 : vector<8xf32> to vector<8x1xf32>
    %cst_14 = arith.constant 1.000000e+00 : f32
    %16 = vector.broadcast %cst_14 : f32 to vector<8x1xf32>
    %17 = arith.divf %16, %15 : vector<8x1xf32>
    %18 = vector.broadcast %17 : vector<8x1xf32> to vector<8x8xf32>
    %19 = arith.mulf %13, %18 : vector<8x8xf32>
    %cst_15 = arith.constant dense<0.000000e+00> : vector<8x32xf32>
    %20 = tpu.matmul %19, %5, %cst_15 {dimension_numbers = #tpu.dot_dimension_numbers<[1], [0], [0], [1], [0, 0, 1, 1], [], []>} : vector<8x8xf32>, vector<8x32xf32>, vector<8x32xf32> -> vector<8x32xf32>
    %c0_16 = arith.constant 0 : index
    %c0_17 = arith.constant 0 : index
    %c0_18 = arith.constant 0 : index
    %c0_19 = arith.constant 0 : index
    %21 = vector.load %arg7[%c0_16, %c0_17, %c0_18, %c0_19] : memref<1x1x8x8xf32, #tpu.memory_space<vmem>>, vector<1x1x8x8xf32>
    %22 = vector.shape_cast %21 : vector<1x1x8x8xf32> to vector<8x8xf32>
    %23 = vector.shape_cast %19 : vector<8x8xf32> to vector<1x1x8x8xf32>
    tpu.vector_store %arg7[%c0_16, %c0_17, %c0_18, %c0_19], %23 {strides = array<i32>} : memref<1x1x8x8xf32, #tpu.memory_space<vmem>>, vector<1x1x8x8xf32>,
    %c0_20 = arith.constant 0 : index
    %c0_21 = arith.constant 0 : index
    %c0_22 = arith.constant 0 : index
    %c0_23 = arith.constant 0 : index
    %24 = vector.load %arg6[%c0_20, %c0_21, %c0_22, %c0_23] : memref<1x1x8x32xf32, #tpu.memory_space<vmem>>, vector<1x1x8x32xf32>
    %25 = vector.shape_cast %24 : vector<1x1x8x32xf32> to vector<8x32xf32>
    %26 = vector.shape_cast %20 : vector<8x32xf32> to vector<1x1x8x32xf32>
    tpu.vector_store %arg6[%c0_20, %c0_21, %c0_22, %c0_23], %26 {strides = array<i32>} : memref<1x1x8x32xf32, #tpu.memory_space<vmem>>, vector<1x1x8x32xf32>,
    return
  }
  func.func @transform_0(%arg0: i32, %arg1: i32, %arg2: i32) -> (i32, i32, i32, i32) {
    %c0_i32 = arith.constant 0 : i32
    %c0_i32_0 = arith.constant 0 : i32
    return %arg0, %arg1, %arg2, %c0_i32 : i32, i32, i32, i32
  }
  func.func @transform_1(%arg0: i32, %arg1: i32, %arg2: i32) -> (i32, i32, i32, i32) {
    %c0_i32 = arith.constant 0 : i32
    %c0_i32_0 = arith.constant 0 : i32
    %c0_i32_1 = arith.constant 0 : i32
    return %arg0, %arg1, %c0_i32, %c0_i32_0 : i32, i32, i32, i32
  }
  func.func @transform_2(%arg0: i32, %arg1: i32, %arg2: i32) -> (i32, i32, i32, i32) {
    %c0_i32 = arith.constant 0 : i32
    %c0_i32_0 = arith.constant 0 : i32
    %c0_i32_1 = arith.constant 0 : i32
    return %arg0, %arg1, %c0_i32, %c0_i32_0 : i32, i32, i32, i32
  }
  func.func @transform_3(%arg0: i32, %arg1: i32, %arg2: i32) -> (i32, i32, i32, i32) {
    %c0_i32 = arith.constant 0 : i32
    %c0_i32_0 = arith.constant 0 : i32
    return %arg0, %arg1, %arg2, %c0_i32 : i32, i32, i32, i32
  }
  func.func @transform_4(%arg0: i32, %arg1: i32, %arg2: i32) -> (i32, i32, i32, i32) {
    %c0_i32 = arith.constant 0 : i32
    %c0_i32_0 = arith.constant 0 : i32
    return %arg0, %arg1, %arg2, %c0_i32 : i32, i32, i32, i32
  }
}

</mosaic_0001>

<bundles_post_ra>
// kernel: tpu_custom_call.1
= control target key start
LH: loop header
LB: loop body
LE: loop exit
PB: predicated region body
PF: predicated region fallthrough
CT: control target
= control target key end

     0   :  { %s1222_s0 = inlined_call_operand.hbm [shape: f32[2,2,8,32], index: 0, kind: input, shape index: {}]   ;;  %s1223_s1 = inlined_call_operand.hbm [shape: f32[2,2,8,32], index: 1, kind: input, shape index: {}]   ;;  %s1224_s2 = inlined_call_operand.hbm [shape: f32[2,2,8,32], index: 2, kind: input, shape index: {}]   ;;  %s1225_s3 = inlined_call_operand.hbm [shape: f32[2,2,8,32], index: 3, kind: output, shape index: {0}]   ;;  %s1226_s4 = inlined_call_operand.hbm [shape: f32[2,2,8,8], index: 4, kind: output, shape index: {1}]  }
   0x1   :  { %1233 = sst [smem:[#allocation22_spill]] %s1223_s1 }
   0x2   :  { %10 = vsyncpa [#allocation3], 0 }
   0x3   :  { %12 = vsyncpa [#allocation3 + $0x1], 0 }
   0x4   :  { %13 = vsyncpa [#allocation6], 0 }
   0x5   :  { %15 = vsyncpa [#allocation6 + $0x1], 0 }
   0x6   :  { %16 = vsyncpa [#allocation4], 0 }
   0x7   :  { %18 = vsyncpa [#allocation4 + $0x1], 0 }
   0x8   :  { %19 = vsyncpa [#allocation10], 0 }
   0x9   :  { %21 = vsyncpa [#allocation10 + $0x1], 0  ;;  %s1017_s15 = smov 0   ;;  %s1019_s16 = smov 0  }
   0xa   :  { %s1021_s17 = smov 0   ;;  %s1023_s18 = smov 0  }
   0xb   :  { %s1025_s19 = smov 0   ;;  %s1027_s20 = smov 0  }
   0xc   :  { %s1029_s21 = smov 0   ;;  %s1031_s22 = smov 0  }
   0xd LB: > { %1234 = sst [smem:[#allocation15_spill]] %s970_s17  ;;  %s1058_s23 = sadd.s32 4294967295, %s990_s22   ;;  %s990_s22 = sphi %s1031_s22, %s27_s22   ;;  %s986_s21 = sphi %s1029_s21, %s1254_s21   ;;  %s982_s20 = sphi %s1027_s20, %s1253_s20   ;;  %s978_s19 = sphi %s1025_s19, %s1252_s19   ;;  %s974_s18 = sphi %s1023_s18, %s1251_s18   ;;  %s970_s17 = sphi %s1021_s17, %s1250_s17   ;;  %s966_s16 = sphi %s1019_s16, %s1256_s16   ;;  %s962_s15 = sphi %s1017_s15, %s1255_s15  }
   0xe   : > { %1235 = sst [smem:[#allocation16_spill]] %s982_s20  ;;  %s640_s24 = sadd.s32 4294967294, %s990_s22  }
   0xf   : > { %1236 = sst [smem:[#allocation17_spill]] %s986_s21  ;;  %s42_s25 = sadd.s32 1, %s982_s20 }
  0x10   : > { %s46_s26 = sadd.s32 1, %s986_s21  ;;  %p44_p0 = scmp.ge.s32.totalorder %s42_s25, 2 }
  0x11   : > { %s57_s27 = sadd.s32 1, %s970_s17  ;;  %p64_p1 = scmp.ne.s32.totalorder %s970_s17, %s966_s16 }
  0x12   : > { %p65_p2 = scmp.eq.s32.totalorder %s990_s22, 0  ;;  %s1258_s25 = smov (%p44_p0, %s42_s25), 0 }
  0x13   : > { %1237 = sst [smem:[#allocation18_spill]] %s1258_s25  ;;  %s1260_s26 = smov (!%p44_p0, %s46_s26), %s986_s21 }
  0x14   : > { %s51_s28 = ssub.s32 %s982_s20, %s1258_s25  ;;  %p1072_p3 = por %p65_p2, %p64_p1 }
  0x15   : > { %p48_p4 = scmp.ge.s32.totalorder %s1260_s26, 2  ;;  %p70_p5 = scmp.ne.s32.totalorder %s966_s16, %s962_s15 }
  0x16   : > { %p71_p6 = scmp.eq.s32.totalorder %s1058_s23, 0  ;;  %p154_p7 = scmp.eq.s32.totalorder %s1058_s23, 3 }
  0x17   : > { %s1262_s26 = smov (%p48_p4, %s1260_s26), 0  ;;  %p160_p10 = scmp.eq.s32.totalorder %s640_s24, 3 }
  0x18   : > { %1239 = sst [smem:[#allocation19_spill]] %s1262_s26  ;;  %p1082_p8 = por %p71_p6, %p70_p5 }
  0x19   : > { %p1086_p9 = por %p154_p7, %p64_p1  ;;  %s50_s6 = ssub.s32 %s986_s21, %s1262_s26 }
  0x1a   : > { %s52_s7 = sor.u32 %s51_s28, %s50_s6  ;;  %p1092_p12 = por %p160_p10, %p70_p5 }
  0x1b   : > { %p55_p11 = scmp.eq.s32.totalorder %s52_s7, 0  ;;  %p696_p13 = scmp.lt.s32.totalorder %s990_s22, 4 }
  0x1c   : > { %s1242_s8 = scalar_select %p1092_p12, 1, 0 }
  0x1d   : > { %s210_s9 = sand.u32 1, %s970_s17   ;;  %s644_s12 = sshll.u32 %s986_s21, 1 }
  0x1e   : > { %1243 = sst [smem:[#allocation20_spill]] %s1242_s8  ;;  %s643_s11 = sshll.u32 %s210_s9, 3 }
  0x1f   : > { %s1099_s10 = scalar_select %p55_p11, %s970_s17, %s57_s27  }
  0x20   : > { %s219_s13 = sadd.s32 %s982_s20, %s644_s12  ;;  %p1105_p0 = pnand %p696_p13, %p1072_p3 }
  0x21   : > { %1244 = sst [smem:[#allocation21_spill]] %s1099_s10  ;;  %s645_s24 = sshll.u32 %s219_s13, 3 }
  0x22   : > { %s232_s28 = sand.u32 1, %s990_s22   ;;  %s1246_s1 = sld [smem:[#allocation22_spill]] }
  0x23   : > { %s236_s8 = scalar_lea.vmem [#allocation5], %s643_s11  ;;  %s233_s21 = scalar_lea.sflag [#allocation6], %s232_s28 }
  0x24   : > { %s246_s27 = sshll.u32 %s236_s8, 4  ;;  %p652_p1 = scmp.ge.s32.totalorder %s990_s22, 1  ;;  %s247_s27 = int_to_ptr.vmem [resolvable:$true] %s246_s27 }
  0x25   : > { %p272_p2 = scmp.lt.s32.totalorder %s990_s22, 5  ;;  %s221_s6 = scalar_lea.hbm %s1222_s0, %s645_s24 }
  0x26   : > { %s214_s7 = scalar_lea.vmem [#allocation2], %s643_s11  ;;  %s211_s8 = scalar_lea.sflag [#allocation3], %s210_s9 }
  0x27   : > { %p1117_p3 = pnand %p652_p1, %p272_p2  ;;  %s257_s10 = scalar_lea.vmem [#allocation7], %s643_s11 }
  0x28   : > { %s242_s26 = scalar_lea.hbm %s1246_s1, %s645_s24  ;;  %s225_s1 = sshll.u32 %s214_s7, 4  ;;  %s226_s1 = int_to_ptr.vmem [resolvable:$true] %s225_s1 }
  0x29   : > { %s244_s25 = sshll.u32 %s242_s26, 4  ;;  %s223_s26 = sshll.u32 %s221_s6, 4  ;;  %s245_s25 = int_to_ptr.hbm [resolvable:$true] %s244_s25  ;;  %s224_s26 = int_to_ptr.hbm [resolvable:$true] %s223_s26 }
  0x2a   : > { %685 = dma.hbm_to_vmem [thread:$0]  (!%p1105_p0), %s245_s25, 128, %s247_s27, %s233_s21  }
  0x2b   : > { %682 = dma.hbm_to_vmem [thread:$0]  (!%p1105_p0), %s224_s26, 128, %s226_s1, %s211_s8  }
  0x2c   : > { %s263_s27 = scalar_lea.hbm %s1224_s2, %s645_s24  ;;  %s267_s17 = sshll.u32 %s257_s10, 4  ;;  %s268_s17 = int_to_ptr.vmem [resolvable:$true] %s267_s17 }
  0x2d   : > { %s265_s20 = sshll.u32 %s263_s27, 4  ;;  %276 = sbr.rel (%p1117_p3) target bundleno = 579 (0x243), region = 32  ;;  %s266_s20 = int_to_ptr.hbm [resolvable:$true] %s265_s20 }
  0x2e   : > { %688 = dma.hbm_to_vmem [thread:$0]  (!%p1105_p0), %s266_s20, 128, %s268_s17, %s233_s21  }
  0x2f   : > { %s1134_s12 = sand.u32 (!%p1117_p3), 1, %s966_s16  }
  0x30   : > { %s1137_s1 = sshll.u32 (!%p1117_p3), %s1134_s12, 3  ;;  %s279_s9 = scalar_lea.sflag (!%p1117_p3), [#allocation3], %s1134_s12 }
  0x31   : > { %s282_s24 = scalar_lea.vmem (!%p1117_p3), [#allocation2], %s1137_s1 }
  0x32   : > { %945 = dma.done.wait (%p1082_p8), %s279_s9, 128  }
  0x33   : > { %947 = vsyncadd (%p1082_p8), %s279_s9, 4294967168  ;;  %s288_s17 = sand.u32 1, %s1058_s23   ;;  %s292_s21 = scalar_lea.vmem [#allocation5], %s1137_s1 }
  0x34   : > { %s289_s20 = scalar_lea.sflag [#allocation6], %s288_s17 }
  0x35   : > { %949 = dma.done.wait (%p1082_p8), %s289_s20, 256  }
  0x36   : > { %951 = vsyncadd (%p1082_p8), %s289_s20, 4294967040  ;;  %vm346_vm0 = vcmask 261120   ;;  %v344_v0 = vld [vmem:[%s292_s21] sm:$0xff]  ;;  %v343_v1 = vld [vmem:[%s282_s24] sm:$0xff]  ;;  %vm374_vm1 = vcmask 64512   ;;  %s302_s23 = scalar_lea.vmem [#allocation7], %s1137_s1 }
  0x37   : > { %658 = vmatpush.xpose.msk.msra.mxu0 %vm346_vm0, %v344_v0  ;;  %v345_v10 = vld [vmem:[%s302_s23] sm:$0xff]  ;;  %s663_s30 = sshll.u32 %s978_s19, 1  ;;  %s342_s19 = scalar_lea.vmem [#allocation9], %s1137_s1 }
  0x38   : > { %418 = vmatpush.msra.mxu1 %v345_v10  ;;  %s1158_s10 = sadd.s32 %s974_s18, %s663_s30  ;;  %s463_s18 = sshll.u32 %s342_s19, 4  ;;  %s464_s18 = int_to_ptr.vmem [resolvable:$true] %s463_s18 }
  0x39   : > { %s664_s11 = sshll.u32 %s1158_s10, 3  ;;  %s431_s26 = scalar_lea.sflag [#allocation10], %s1134_s12 }
  0x3a   : > { %659 = vmatmul.msk.f32.vlgmr.msra.gmra.mxu0 %vm346_vm0, %v343_v1  ;;  %s461_s13 = scalar_lea.hbm %s1226_s4, %s664_s11  ;;  %s876_s27 = scalar_lea.hbm %s1226_s4, 32 }
  0x3b   : > { %s465_s6 = sshll.u32 %s461_s13, 4  ;;  %s466_s6 = int_to_ptr.hbm [resolvable:$true] %s465_s6 }
  0x3c   : > { %s870_s7 = sshra.s32 %s466_s6, 4  ;;  %s871_s7 = int_to_ptr.hbm [resolvable:$true] %s870_s7 }
  0x3d   : > { %s872_s8 = scalar_lea.hbm %s871_s7, 8  ;;  %p877_p7 = scmp.lt.s32.totalorder %s871_s7, %s1226_s4 }
  0x3e   : > { %p873_p4 = scmp.ne.s32.totalorder %s871_s7, %s872_s8  ;;  %p878_p8 = scmp.lt.s32.totalorder %s876_s27, %s872_s8 }
  0x40   : > { %p874_p5 = pnand %p873_p4, %p1086_p9  ;;  %p879_p10 = por %p878_p8, %p877_p7 }
  0x42   : > { %p875_p6 = pneg %p874_p5 }
  0x44   : > { %p880_p11 = pnand %p879_p10, %p875_p6 }
  0xb7   : > { %v370_v2 = vpop.f32.mrf.mxu0 }
  0xb8   : > { %v373_v3 = vmul.f32 0.17677669, %v370_v2 }
  0xba   : > { %v375_v4 = vsel %vm374_vm1, %v373_v3, -inf }
  0xbb   : > { %376 = vmax.xlane.f32.xlu0 %v375_v4 }
 0x12e   : > { %v377_v5 = vpop.xlane.xlu0 %376 }
 0x12f   : > { %v378_v6 = vsub.f32 %v373_v3, %v377_v5 }
 0x131   : > { %v379_v7 = vmul.f32 1.442695, %v378_v6 }
 0x133   : > { %762 = vpow2.f32 %v379_v7 }
 0x139   : > { %v763_v8 = vpop.eup %762 }
 0x13a   : > { %v381_v9 = vsel %vm374_vm1, %v763_v8, 0.0 }
 0x13b   : > { %382 = vadd.xlane.f32.xlu0 %v381_v9 }
 0x1ae   : > { %v383_v11 = vpop.xlane.xlu0 %382 }
 0x1af   : > { %764 = vrcp.f32 %v383_v11  ;;  %v395_v15 = vand.u32 2147483648, %v383_v11  ;;  %v393_v17 = vand.u32 2147483647, %v383_v11  ;;  %vm389_vm3 = vweird.f32 %v383_v11 }
 0x1b1   : > { %v396_v19 = vor.u32 1.1754944e-38, %v395_v15  ;;  %vm394_vm5 = vcmp.eq.f32.partialorder %v393_v17, 8.507059e+37 }
 0x1b5   : > { %v765_v12 = vpop.eup %764 }
 0x1b6   : > { %v385_v13 = vmul.f32 %v765_v12, %v383_v11  ;;  %vm390_vm2 = vweird.f32 %v765_v12 }
 0x1b7   : > { %vm391_vm4 = vmor %vm389_vm3, %vm390_vm2 }
 0x1b8   : > { %v386_v14 = vsub.f32 1.0, %v385_v13 }
 0x1ba   : > { %v387_v16 = vmul.f32 %v765_v12, %v386_v14 }
 0x1bc   : > { %v388_v18 = vadd.f32 %v765_v12, %v387_v16 }
 0x1be   : > { %v392_v20 = vsel %vm391_vm4, %v765_v12, %v388_v18 }
 0x1bf   : > { %v397_v21 = vsel %vm394_vm5, %v396_v19, %v392_v20 }
 0x1c0   : > { %v399_v22 = vmul.f32 %v763_v8, %v397_v21 }
 0x1c2   : > { %660 = vmatmul.msk.f32.vlgmr.msra.gmra.mxu1 %vm374_vm1, %v399_v22  ;;  %423 = vst.msk [vmem:[%s342_s19] sm:$0xff] %vm374_vm1, %v399_v22 }
 0x1c3   : > { %883 = shalt.err (!%p880_p11)
}
 0x1c4   : > { %676 = dma.vmem_to_hbm [thread:$0]  (%p1086_p9), %s464_s18, 128, %s466_s6, %s431_s26  }
 0x1c5   : > { %s444_s21 = scalar_lea.hbm %s1225_s3, %s664_s11  ;;  %s335_s23 = scalar_lea.vmem [#allocation8], %s1137_s1 }
 0x1c6   : > { %s446_s30 = sshll.u32 %s335_s23, 4  ;;  %s448_s10 = sshll.u32 %s444_s21, 4  ;;  %s447_s30 = int_to_ptr.vmem [resolvable:$true] %s446_s30  ;;  %s449_s10 = int_to_ptr.hbm [resolvable:$true] %s448_s10 }
 0x1c7   : > { %s426_s14 = scalar_lea.sflag [#allocation4], %s1134_s12  ;;  %s898_s29 = sshra.s32 %s449_s10, 4  ;;  %s899_s29 = int_to_ptr.hbm [resolvable:$true] %s898_s29 }
 0x1c8   : > { %s900_s13 = scalar_lea.hbm %s899_s29, 8  ;;  %s904_s11 = scalar_lea.hbm %s1225_s3, 32 }
 0x1c9   : > { %p901_p13 = scmp.ne.s32.totalorder %s899_s29, %s900_s13  ;;  %p905_p2 = scmp.lt.s32.totalorder %s899_s29, %s1225_s3 }
 0x1ca   : > { %p906_p3 = scmp.lt.s32.totalorder %s904_s11, %s900_s13 }
 0x1cb   : > { %p902_p0 = pnand %p901_p13, %p1086_p9 }
 0x1cc   : > { %p907_p4 = por %p906_p3, %p905_p2 }
 0x1cd   : > { %p903_p1 = pneg %p902_p0 }
 0x1cf   : > { %p908_p5 = pnand %p907_p4, %p903_p1 }
 0x23f   : > { %v420_v23 = vpop.f32.mrf.mxu1 }
 0x240   : > { %424 = vst.msk [vmem:[%s335_s23] sm:$0xff] %vm346_vm0, %v420_v23 }
 0x241   : > { %911 = shalt.err (!%p908_p5)
}
 0x242   : > { %675 = dma.vmem_to_hbm [thread:$0]  (%p1086_p9), %s447_s30, 128, %s449_s10, %s426_s14  }
 0x243 PF: > { %p697_p6 = scmp.ge.s32.totalorder %s990_s22, 2  ;;  %s477_s26 = sand.u32 1, %s962_s15  }
 0x244   : > { %s478_s7 = scalar_lea.sflag [#allocation4], %s477_s26 }
 0x245   : > { %p690_p7 = pnand %p697_p6, %p1092_p12 }
 0x247   : > { %p691_p8 = pneg %p690_p7 }
 0x249   : > { %953 = dma.done.wait (%p691_p8), %s478_s7, 128  }
 0x24a   : > { %955 = vsyncadd (%p691_p8), %s478_s7, 4294967168  ;;  %s488_s8 = scalar_lea.sflag [#allocation10], %s477_s26 }
 0x24b   : > { %957 = dma.done.wait (%p691_p8), %s488_s8, 128  }
 0x24c   : > { %959 = vsyncadd (%p691_p8), %s488_s8, 4294967168  ;;  %s27_s22 = sadd.s32 1, %s990_s22   ;;  %s1249_s5 = sld [smem:[#allocation15_spill]] }
 0x24d   : > { %p24_p10 = scmp.ge.s32.totalorder %s27_s22, 6   ;;  %s1250_s17 = sld [smem:[#allocation21_spill]] }
 0x24e   : > { %s1251_s18 = sld [smem:[#allocation16_spill]]  ;;  %s1255_s15 = smov %s966_s16 }
 0x24f   : > { %s1252_s19 = sld [smem:[#allocation17_spill]]  ;;  %26 = sbr.rel (!%p24_p10) target bundleno = 13 (0xd), region = 118 }
 0x250   : > { %s1253_s20 = sld [smem:[#allocation18_spill]] }
 0x251   : > { %s1254_s21 = sld [smem:[#allocation19_spill]] }
 0x252   : > { %s1256_s16 = smov %s1249_s5 }
 0x254   :  { %494 = vsyncpa [#allocation3], 1 }
 0x255   :  { %496 = vsyncpa [#allocation3 + $0x1], 1 }
 0x256   :  { %497 = vsyncpa [#allocation6], 1 }
 0x257   :  { %499 = vsyncpa [#allocation6 + $0x1], 1 }
 0x258   :  { %500 = vsyncpa [#allocation4], 1 }
 0x259   :  { %502 = vsyncpa [#allocation4 + $0x1], 1 }
 0x25a   :  { %503 = vsyncpa [#allocation10], 1 }
 0x25b   :  { %505 = vsyncpa [#allocation10 + $0x1], 1 }

</bundles_post_ra>
